<compile_context>
chip_gen: v7x
topology: tpu7x:2x2x1
jax: 0.10.0
libtpu: 0.0.40
codegen_flags: <defaults>
</compile_context>

<pallas_src>
import jax
import jax.numpy as jnp
from jax.experimental import pallas as pl
from jax.experimental.pallas import tpu as pltpu

EPS = 1e-5


def _bn_linear(x, wt, gamma, beta):
    """Linear (no bias) + batch-statistic BatchNorm1d, all in f32.

    x: (N, F_in); wt: (F_in, F_out); gamma/beta: (1, F_out).
    """
    y = jnp.dot(x, wt, preferred_element_type=jnp.float32)       # MXU, (N, F_out)
    inv_n = 1.0 / y.shape[0]
    mean = jnp.sum(y, axis=0, keepdims=True) * inv_n              # (1, F_out)
    centered = y - mean
    var = jnp.sum(centered * centered, axis=0, keepdims=True) * inv_n
    inv_std = jax.lax.rsqrt(var + EPS)                            # EUP
    scale = inv_std * gamma                                       # fused affine, (1,F) op
    return centered * scale + beta


def _buffer_model1_kernel(x_ref, wt_ref, gb_ref, o_ref):
    gb = gb_ref[...]                                              # (2, F_out)
    out = _bn_linear(x_ref[...].astype(jnp.float32),
                     wt_ref[...].astype(jnp.float32),
                     gb[0:1, :], gb[1:2, :])
    o_ref[...] = out.astype(o_ref.dtype)


def _buffer_model1_batched_kernel(x_ref, wt_ref, gb_ref, o_ref):
    # Each grid step owns one full model instance -> BN stats stay per-instance.
    gb = gb_ref[0]                                                # (2, F_out)
    out = _bn_linear(x_ref[0].astype(jnp.float32),
                     wt_ref[0].astype(jnp.float32),
                     gb[0:1, :], gb[1:2, :])
    o_ref[0] = out.astype(o_ref.dtype)


def make_buffer_model1(w, b, gamma, beta):
    """Build a jitted forward fn for one BufferModel1 instance.

    w: (10, 10) PyTorch layout (out, in); b/gamma/beta: (10,).
    `b` is accepted for interface parity but cancels exactly under
    batch-statistic BatchNorm, so it never enters the kernel.
    Parameter reshaping happens HERE, once, not per call.
    """
    del b
    wt = jnp.asarray(w).T                                         # (F_in, F_out), once
    gb = jnp.stack([jnp.asarray(gamma), jnp.asarray(beta)])       # (2, F_out), once
    f_in, f_out = wt.shape

    @jax.jit
    def apply(x):
        n = x.shape[0]
        full = lambda shape: pl.BlockSpec(shape, lambda: (0,) * len(shape))
        return pl.pallas_call(
            _buffer_model1_kernel,
            out_shape=jax.ShapeDtypeStruct((n, f_out), x.dtype),
            grid=(),
            in_specs=[full((n, f_in)), full((f_in, f_out)), full((2, f_out))],
            out_specs=full((n, f_out)),
        )(x, wt, gb)

    return apply


@jax.jit
def buffer_model1_batched(x, wt, gb):
    """G independent BufferModel1 instances in one launch.

    x: (G, N, F_in); wt: (G, F_in, F_out) [already transposed]; gb: (G, 2, F_out).
    Grid axis marked "parallel" so v7x shards instances across its 2 TensorCores.
    """
    g_dim, n, f_in = x.shape
    f_out = wt.shape[-1]
    spec = lambda shape: pl.BlockSpec(shape, lambda g: (g,) + (0,) * (len(shape) - 1))
    return pl.pallas_call(
        _buffer_model1_batched_kernel,
        out_shape=jax.ShapeDtypeStruct((g_dim, n, f_out), x.dtype),
        grid=(g_dim,),
        in_specs=[spec((1, n, f_in)), spec((1, f_in, f_out)), spec((1, 2, f_out))],
        out_specs=spec((1, n, f_out)),
        compiler_params=pltpu.CompilerParams(dimension_semantics=("parallel",)),
    )(x, wt, gb)


def _reference(x, w, b, gamma, beta):
    """Pure-JAX reference of the original module's math (bias included)."""
    y = x @ w.T + b
    mu = y.mean(axis=0, keepdims=True)
    var = ((y - mu) ** 2).mean(axis=0, keepdims=True)
    return (y - mu) / jnp.sqrt(var + EPS) * gamma + beta


if __name__ == "__main__":
    key = jax.random.PRNGKey(0)
    N, F = 8, 10
    kx, kw, kb, kg, kbe, kbatch = jax.random.split(key, 6)

    x = jax.random.normal(kx, (N, F), dtype=jnp.float32)
    bound = 1.0 / (F ** 0.5)
    w = jax.random.uniform(kw, (F, F), jnp.float32, -bound, bound)   # (out, in)
    b = jax.random.uniform(kb, (F,), jnp.float32, -bound, bound)
    gamma = 1.0 + 0.1 * jax.random.normal(kg, (F,), dtype=jnp.float32)
    beta = 0.1 * jax.random.normal(kbe, (F,), dtype=jnp.float32)

    # --- single-instance path (params hoisted once in make_buffer_model1) ---
    model = make_buffer_model1(w, b, gamma, beta)
    out = model(x)
    jax.block_until_ready(out)

    ref = _reference(x, w, b, gamma, beta)
    assert out.shape == (N, F)
    assert jnp.allclose(out, ref, atol=1e-5, rtol=1e-5), "single-instance mismatch"

    # --- batched path: G instances under one grid, "parallel" semantics ---
    G = 4
    k0, k1, k2, k3 = jax.random.split(kbatch, 4)
    xs = jax.random.normal(k0, (G, N, F), dtype=jnp.float32)
    ws = jax.random.uniform(k1, (G, F, F), jnp.float32, -bound, bound)
    gammas = 1.0 + 0.1 * jax.random.normal(k2, (G, F), dtype=jnp.float32)
    betas = 0.1 * jax.random.normal(k3, (G, F), dtype=jnp.float32)

    wts = jnp.transpose(ws, (0, 2, 1))            # (G, F_in, F_out), once at init
    gbs = jnp.stack([gammas, betas], axis=1)      # (G, 2, F_out), once at init
    out_b = buffer_model1_batched(xs, wts, gbs)
    jax.block_until_ready(out_b)

    zero_b = jnp.zeros((F,), jnp.float32)
    for g in range(G):
        ref_g = _reference(xs[g], ws[g], zero_b, gammas[g], betas[g])
        assert jnp.allclose(out_b[g], ref_g, atol=1e-5, rtol=1e-5), f"batched mismatch @ {g}"

    print("KERNEL_OK")
</pallas_src>

<mosaic_0001>
module attributes {stable_mosaic.version = 11 : i64} {
  func.func @_buffer_model1_kernel(%arg0: memref<8x10xf32, #tpu.memory_space<vmem>>, %arg1: memref<10x10xf32, #tpu.memory_space<vmem>>, %arg2: memref<2x10xf32, #tpu.memory_space<vmem>>, %arg3: memref<8x10xf32, #tpu.memory_space<vmem>>) attributes {dimension_semantics = [], scalar_prefetch = 0 : i64, scratch_operands = 0 : i64, tpu.core_type = #tpu.core_type<tc>} {
    %c0 = arith.constant 0 : index
    %c0_0 = arith.constant 0 : index
    %0 = vector.load %arg2[%c0, %c0_0] : memref<2x10xf32, #tpu.memory_space<vmem>>, vector<2x10xf32>
    %c0_1 = arith.constant 0 : index
    %c0_2 = arith.constant 0 : index
    %1 = vector.load %arg0[%c0_1, %c0_2] : memref<8x10xf32, #tpu.memory_space<vmem>>, vector<8x10xf32>
    %c0_3 = arith.constant 0 : index
    %c0_4 = arith.constant 0 : index
    %2 = vector.load %arg1[%c0_3, %c0_4] : memref<10x10xf32, #tpu.memory_space<vmem>>, vector<10x10xf32>
    %3 = vector.extract_strided_slice %0 {offsets = [0, 0], sizes = [1, 10], strides = [1, 1]} : vector<2x10xf32> to vector<1x10xf32>
    %4 = vector.extract_strided_slice %0 {offsets = [1, 0], sizes = [1, 10], strides = [1, 1]} : vector<2x10xf32> to vector<1x10xf32>
    %cst = arith.constant dense<0.000000e+00> : vector<8x10xf32>
    %5 = tpu.matmul %1, %2, %cst {dimension_numbers = #tpu.dot_dimension_numbers<[1], [0], [0], [1], [0, 0, 1, 1], [], []>} : vector<8x10xf32>, vector<10x10xf32>, vector<8x10xf32> -> vector<8x10xf32>
    %cst_5 = arith.constant dense<0.000000e+00> : vector<10xf32>
    %6 = vector.multi_reduction <add>, %5, %cst_5 [0] : vector<8x10xf32> to vector<10xf32>
    %7 = vector.shape_cast %6 : vector<10xf32> to vector<1x10xf32>
    %cst_6 = arith.constant 1.250000e-01 : f32
    %8 = vector.broadcast %cst_6 : f32 to vector<1x10xf32>
    %9 = arith.mulf %7, %8 : vector<1x10xf32>
    %10 = vector.broadcast %9 : vector<1x10xf32> to vector<8x10xf32>
    %11 = arith.subf %5, %10 : vector<8x10xf32>
    %12 = arith.mulf %11, %11 : vector<8x10xf32>
    %cst_7 = arith.constant dense<0.000000e+00> : vector<10xf32>
    %13 = vector.multi_reduction <add>, %12, %cst_7 [0] : vector<8x10xf32> to vector<10xf32>
    %14 = vector.shape_cast %13 : vector<10xf32> to vector<1x10xf32>
    %cst_8 = arith.constant 1.250000e-01 : f32
    %15 = vector.broadcast %cst_8 : f32 to vector<1x10xf32>
    %16 = arith.mulf %14, %15 : vector<1x10xf32>
    %cst_9 = arith.constant 9.99999974E-6 : f32
    %17 = vector.broadcast %cst_9 : f32 to vector<1x10xf32>
    %18 = arith.addf %16, %17 : vector<1x10xf32>
    %19 = math.rsqrt %18 : vector<1x10xf32>
    %20 = arith.mulf %19, %3 : vector<1x10xf32>
    %21 = vector.broadcast %20 : vector<1x10xf32> to vector<8x10xf32>
    %22 = arith.mulf %11, %21 : vector<8x10xf32>
    %23 = vector.broadcast %4 : vector<1x10xf32> to vector<8x10xf32>
    %24 = arith.addf %22, %23 : vector<8x10xf32>
    %c0_10 = arith.constant 0 : index
    %c0_11 = arith.constant 0 : index
    %25 = vector.load %arg3[%c0_10, %c0_11] : memref<8x10xf32, #tpu.memory_space<vmem>>, vector<8x10xf32>
    tpu.vector_store %arg3[%c0_10, %c0_11], %24 {strides = array<i32>} : memref<8x10xf32, #tpu.memory_space<vmem>>, vector<8x10xf32>,
    return
  }
}

</mosaic_0001>

<bundles_post_ra>
// kernel: apply.1
= control target key start
LH: loop header
LB: loop body
LE: loop exit
PB: predicated region body
PF: predicated region fallthrough
CT: control target
= control target key end

     0   :  { %8 = vsyncpa [#allocation3], 0  ;;  %s349_s0 = inlined_call_operand.hbm [shape: f32[8,10], index: 0, kind: input, shape index: {}]   ;;  %s350_s1 = inlined_call_operand.hbm [shape: f32[10,10], index: 1, kind: input, shape index: {}]   ;;  %s351_s2 = inlined_call_operand.vmem [shape: f32[2,10], index: 2, kind: input, shape index: {}]   ;;  %s352_s3 = inlined_call_operand.hbm [shape: f32[8,10], index: 3, kind: output, shape index: {}]  }
   0x1   :  { %9 = vsyncpa [#allocation6], 0 }
   0x2   :  { %10 = vsyncpa [#allocation4], 0  ;;  %s270_s12 = smov [#allocation2]   ;;  %s271_s14 = smov [#allocation5]  }
   0x3   :  { %s17_s13 = sshll.u32 %s270_s12, 4  ;;  %s26_s15 = sshll.u32 %s271_s14, 4  ;;  %s18_s13 = int_to_ptr.vmem [resolvable:$true] %s17_s13  ;;  %s299_s15 = int_to_ptr.vmem [resolvable:$true] %s26_s15 }
   0x4   :  { %s198_s18 = scalar_lea.hbm %s349_s0, 128 }
   0x5   :  { %p199_p0 = scmp.ne.s32.totalorder %s349_s0, %s198_s18  ;;  %p202_p1 = scmp.lt.u32.totalorder %s198_s18, %s349_s0 }
   0x7   :  { %p204_p2 = pnand %p202_p1, %p199_p0 }
   0x9   :  { %207 = shalt.err (!%p204_p2)
}
   0xa   :  { %s208_s23 = scalar_lea.vmem %s18_s13, 128  ;;  %p213_p4 = scmp.lt.s32.totalorder %s18_s13, %s18_s13 }
   0xb   :  { %p209_p3 = scmp.ne.s32.totalorder %s18_s13, %s208_s23  ;;  %p214_p5 = scmp.lt.s32.totalorder %s208_s23, %s208_s23 }
   0xd   :  { %p215_p6 = por %p214_p5, %p213_p4 }
   0xf   :  { %p216_p7 = pnand %p215_p6, %p209_p3 }
  0x11   :  { %219 = shalt.err (!%p216_p7)
}
  0x12   :  { %20 = dma.hbm_to_vmem [thread:$0]  %s349_s0, 128, %s18_s13, [#allocation3]  }
  0x13   :  { %s220_s28 = scalar_lea.hbm %s350_s1, 256 }
  0x14   :  { %p221_p8 = scmp.ne.s32.totalorder %s350_s1, %s220_s28  ;;  %p224_p9 = scmp.lt.u32.totalorder %s220_s28, %s350_s1 }
  0x16   :  { %p226_p10 = pnand %p224_p9, %p221_p8 }
  0x18   :  { %229 = shalt.err (!%p226_p10)
}
  0x19   :  { %s230_s6 = scalar_lea.vmem %s299_s15, 256  ;;  %p235_p12 = scmp.lt.s32.totalorder %s299_s15, %s299_s15 }
  0x1a   :  { %p231_p11 = scmp.ne.s32.totalorder %s299_s15, %s230_s6  ;;  %p236_p13 = scmp.lt.s32.totalorder %s230_s6, %s230_s6 }
  0x1c   :  { %p237_p0 = por %p236_p13, %p235_p12 }
  0x1e   :  { %p238_p1 = pnand %p237_p0, %p231_p11 }
  0x20   :  { %241 = shalt.err (!%p238_p1)
}
  0x21   :  { %s272_s0 = smov 128   ;;  %s273_s7 = smov 8  }
  0x22   :  { %32 = dma.hbm_to_vmem [thread:$0]  %s350_s1, 256, %s299_s15, [#allocation6], %s272_s0, %s272_s0, %s273_s7  }
  0x23   :  { %264 = dma.done.wait [#allocation3], 128  }
  0x24   :  { %265 = vsyncadd [#allocation3], 4294967168 }
  0x25   :  { %266 = dma.done.wait [#allocation6], 256  }
  0x26   :  { %267 = vsyncadd [#allocation6], 4294967040  ;;  %v274_v0 = vmov 0.0|0.0   ;;  %vm275_vm0 = vmmov 0   ;;  %v276_v1 = vmov 0.0   ;;  %vm49_vm1 = vcmask 1041408  }
  0x27   :  { %183 = vmatprep.subr.bf16.mxu0 %v274_v0  ;;  %180 = vmatprep.mubr.msk.f32.mxu0 %vm275_vm0, %v276_v1  ;;  %v43_v2 = vld [vmem:[#allocation5] sm:$0xff]  ;;  %v44_v3 = vld [vmem:[#allocation5 + $0x8] sm:$0x3]  ;;  %vm277_vm2 = vmmov 1   ;;  %v42_v5 = vld [vmem:[#allocation2] sm:$0xff]  ;;  %vm45_vm4 = vcmask 80896   ;;  %v144_v27 = vlaneseq }
  0x28   :  { %vm185_vm3 = vmpackc.low %vm49_vm1, %vm277_vm2  ;;  %v184_v4 = vpack.c.bf16 %v44_v3, %v43_v2  ;;  %v41_v29 = vld [vmem:[%s351_s2] sm:$0x3]  ;;  %s278_s11 = smov [#allocation7]  }
  0x29   :  { %v145_v28 = vshrl.u32 %v144_v27, 7  ;;  %s161_s12 = sshll.u32 %s278_s11, 4  ;;  %s162_s12 = int_to_ptr.vmem [resolvable:$true] %s161_s12 }
  0x2a   :  { %186 = vmatpush3.bf16.msk.msra.mxu0 %vm185_vm3, %v184_v4  ;;  %s242_s13 = scalar_lea.vmem %s162_s12, 128  ;;  %p247_p3 = scmp.lt.s32.totalorder %s162_s12, %s162_s12 }
  0x2b   :  { %v146_v30 = vsub.s32 0, %v145_v28  ;;  %v151_v31 = vsub.s32 1, %v145_v28  ;;  %p243_p2 = scmp.ne.s32.totalorder %s162_s12, %s242_s13  ;;  %p248_p4 = scmp.lt.s32.totalorder %s242_s13, %s242_s13 }
  0x2d   :  { %181 = vmatmul.mubr.msk.f32.vlgmr.msra.gmra.mrb[0].mxu0 %vm45_vm4, %v42_v5  ;;  %v152_v35 = vrot.slane %v41_v29, %v151_v31  ;;  %p249_p5 = por %p248_p4, %p247_p3 }
  0x2f   :  { %p250_p6 = pnand %p249_p5, %p243_p2 }
 0x100   :  { %v119_v6 = vpop.f32.mrb[0].mxu0 }
 0x101   :  { %v123_v7 = vsel %vm45_vm4, %v119_v6, 0.0  ;;  %v182_v8 = vpop.f32.mrb[1].mxu0 }
 0x102   :  { %v124_v9 = vrot.slane %v123_v7, 4 }
 0x104   :  { %v125_v10 = vadd.f32 %v124_v9, %v123_v7 }
 0x106   :  { %v126_v11 = vrot.slane %v125_v10, 2 }
 0x108   :  { %v127_v12 = vadd.f32 %v126_v11, %v125_v10 }
 0x10a   :  { %v128_v13 = vrot.slane %v127_v12, 1 }
 0x10c   :  { %v129_v14 = vadd.f32 %v128_v13, %v127_v12 }
 0x10e   :  { %v130_v15 = vmul.f32 0.125, %v129_v14 }
 0x110   :  { %v131_v16 = vsub.f32 %v119_v6, %v130_v15 }
 0x112   :  { %v132_v17 = vmul.f32 %v131_v16, %v131_v16 }
 0x114   :  { %v133_v18 = vsel %vm45_vm4, %v132_v17, 0.0 }
 0x115   :  { %v134_v19 = vrot.slane %v133_v18, 4 }
 0x117   :  { %v135_v20 = vadd.f32 %v134_v19, %v133_v18 }
 0x119   :  { %v136_v21 = vrot.slane %v135_v20, 2 }
 0x11b   :  { %v137_v22 = vadd.f32 %v136_v21, %v135_v20 }
 0x11d   :  { %v138_v23 = vrot.slane %v137_v22, 1 }
 0x11f   :  { %v139_v24 = vadd.f32 %v138_v23, %v137_v22 }
 0x121   :  { %v140_v25 = vmul.f32 0.125, %v139_v24 }
 0x123   :  { %v141_v26 = vadd.f32 1e-05, %v140_v25 }
 0x125   :  { %196 = vrsqrt.f32 %v141_v26 }
 0x12f   :  { %v197_v32 = vpop.eup %196 }
 0x130   :  { %v143_v33 = vmul.f32 %v197_v32, %v41_v29 }
 0x132   :  { %v147_v34 = vrot.slane %v143_v33, %v146_v30 }
 0x134   :  { %v148_v36 = vmul.f32 %v147_v34, %v131_v16 }
 0x136   :  { %v153_v37 = vadd.f32 %v152_v35, %v148_v36 }
 0x138   :  { %154 = vst.msk [vmem:[#allocation7] sm:$0xff] %vm45_vm4, %v153_v37 }
 0x139   :  { %253 = shalt.err (!%p250_p6)
}
 0x13a   :  { %s254_s15 = scalar_lea.hbm %s352_s3, 128 }
 0x13b   :  { %p255_p7 = scmp.ne.s32.totalorder %s352_s3, %s254_s15  ;;  %p258_p8 = scmp.lt.u32.totalorder %s254_s15, %s352_s3 }
 0x13d   :  { %p260_p9 = pnand %p258_p8, %p255_p7 }
 0x13f   :  { %263 = shalt.err (!%p260_p9)
}
 0x140   :  { %164 = dma.vmem_to_hbm [thread:$0]  %s162_s12, 128, %s352_s3, [#allocation4]  }
 0x141   :  { %268 = dma.done.wait [#allocation4], 128  }
 0x142   :  { %269 = vsyncadd [#allocation4], 4294967168 }
 0x143   :  { %168 = vsyncpa [#allocation3], 1 }
 0x144   :  { %169 = vsyncpa [#allocation6], 1 }
 0x145   :  { %170 = vsyncpa [#allocation4], 1 }

</bundles_post_ra>
